<compile_context>
chip_gen: v6e
topology: v6e:2x2x1
jax: 0.10.0
libtpu: 0.0.40
codegen_flags: <defaults>
</compile_context>

<pallas_src>
import functools

import jax
import jax.numpy as jnp
from jax.experimental import pallas as pl
from jax.experimental.pallas import tpu as pltpu


def _round_up(n, m):
    return ((n + m - 1) // m) * m


def value_mlp_kernel(
    x_ref,
    w1_ref, b1_ref,
    w2_ref, b2_ref,
    w3_ref, b3_ref,
    w4_ref, b4_ref,
    w5_ref, b5_ref,
    o_ref,
):
    """One batch tile of the fused 5-layer value MLP.

    Hidden-layer weights arrive pre-cast (bf16 by default) for the MXU; the
    activations are cast right before each dot, matmuls accumulate in f32 and
    bias + ReLU are done in f32 on the VPU.
    """

    def dense_relu(h, w_ref, b_ref):
        y = jnp.dot(h.astype(w_ref.dtype), w_ref[...],
                    preferred_element_type=jnp.float32)
        return jnp.maximum(y + b_ref[...], 0.0)

    h = dense_relu(x_ref[...], w1_ref, b1_ref)
    h = dense_relu(h, w2_ref, b2_ref)
    h = dense_relu(h, w3_ref, b3_ref)
    h = dense_relu(h, w4_ref, b4_ref)

    # Final layer has out_features == 1: an MXU pass would use 1/128-1/256 of
    # the array, so do it as a VPU multiply + lane (XLU) reduction instead.
    out = jnp.sum(h * w5_ref[...], axis=-1, keepdims=True) + b5_ref[...]
    o_ref[...] = out.astype(o_ref.dtype)


def value_forward(x, params, *, block_batch=256, use_bf16=True):
    """x: (B, state_size) float32 -> (B, 1) float32."""
    B, S = x.shape
    (w1, b1), (w2, b2), (w3, b3), (w4, b4), (w5, b5) = params

    mxu_dtype = jnp.bfloat16 if use_bf16 else jnp.float32
    # Pre-cast the resident hidden-layer weights once (halves their DMA bytes
    # and avoids a per-tile cast).  Final-layer weight (used only on the VPU)
    # and all biases stay f32.  w5 is passed as a (1, 64) row for the
    # broadcast-multiply + lane reduce.
    w_ops = (
        w1.astype(mxu_dtype), b1,
        w2.astype(mxu_dtype), b2,
        w3.astype(mxu_dtype), b3,
        w4.astype(mxu_dtype), b4,
        w5.reshape(1, -1).astype(jnp.float32), b5,
    )

    # Batch tile: multiple of 8 sublanes, capped at block_batch rows.
    TB = min(block_batch, _round_up(B, 8))
    B_pad = _round_up(B, TB)
    if B_pad != B:
        x = jnp.pad(x, ((0, B_pad - B), (0, 0)))

    in_specs = [pl.BlockSpec((TB, S), lambda i: (i, 0))] + [
        # Constant block index => each weight/bias is DMA'd once and stays
        # VMEM-resident for the whole grid.  Default-arg capture avoids the
        # late-binding-closure bug from the previous version.
        pl.BlockSpec(op.shape, lambda i, _nd=op.ndim: (0,) * _nd)
        for op in w_ops
    ]

    out = pl.pallas_call(
        value_mlp_kernel,
        out_shape=jax.ShapeDtypeStruct((B_pad, 1), jnp.float32),
        grid=(B_pad // TB,),
        in_specs=in_specs,
        out_specs=pl.BlockSpec((TB, 1), lambda i: (i, 0)),
        compiler_params=pltpu.CompilerParams(
            dimension_semantics=("parallel",),
        ),
    )(x, *w_ops)
    return out[:B]


def init_params(key, state_size, hidden_size=16):
    """Deterministic init matching nn.Linear defaults (Kaiming-uniform-ish).

    Weights are (in_features, out_features); biases kept 2-D (1, out_features)
    for TPU-friendly broadcasting inside the kernel.
    """
    dims = [state_size, hidden_size, hidden_size * 4, hidden_size * 16,
            hidden_size * 4, 1]
    params = []
    for i in range(len(dims) - 1):
        fan_in, fan_out = dims[i], dims[i + 1]
        key, kw, kb = jax.random.split(key, 3)
        bound = 1.0 / jnp.sqrt(jnp.float32(fan_in))
        w = jax.random.uniform(kw, (fan_in, fan_out), jnp.float32, -bound, bound)
        b = jax.random.uniform(kb, (1, fan_out), jnp.float32, -bound, bound)
        params.append((w, b))
    return params


def value_forward_ref(x, params, *, use_bf16=True):
    """Pure-JAX reference mimicking the kernel's bf16-in / f32-accumulate math."""
    (w1, b1), (w2, b2), (w3, b3), (w4, b4), (w5, b5) = params
    mxu_dtype = jnp.bfloat16 if use_bf16 else jnp.float32
    h = x
    for w, b in ((w1, b1), (w2, b2), (w3, b3), (w4, b4)):
        y = jnp.dot(h.astype(mxu_dtype), w.astype(mxu_dtype),
                    preferred_element_type=jnp.float32)
        h = jnp.maximum(y + b, 0.0)
    return jnp.sum(h * w5.reshape(1, -1), axis=-1, keepdims=True) + b5


def value_forward_ref_f32(x, params):
    """Full-f32 reference (matches the original PyTorch module numerics)."""
    h = x
    for i, (w, b) in enumerate(params):
        h = h @ w + b
        if i < len(params) - 1:
            h = jnp.maximum(h, 0.0)
    return h


if __name__ == "__main__":
    state_size = 32
    params = init_params(jax.random.PRNGKey(0), state_size)

    # batch=8: single small tile; batch=300: exercises tiling (TB=256),
    # padding to 512 rows and the 2-step parallel grid.
    for batch in (8, 300):
        kx = jax.random.fold_in(jax.random.PRNGKey(0), batch)
        x = jax.random.normal(kx, (batch, state_size), jnp.float32)

        out = jax.block_until_ready(value_forward(x, params))
        assert out.shape == (batch, 1), out.shape

        ref = value_forward_ref(x, params)
        err = float(jnp.max(jnp.abs(out - ref)))
        assert jnp.allclose(out, ref, atol=2e-3, rtol=2e-3), (
            f"bf16-ref mismatch (B={batch}): max abs err {err}")

        ref32 = value_forward_ref_f32(x, params)
        err32 = float(jnp.max(jnp.abs(out - ref32)))
        assert jnp.allclose(out, ref32, atol=0.15, rtol=0.15), (
            f"f32-ref mismatch (B={batch}): max abs err {err32}")

    print("KERNEL_OK")
</pallas_src>

<mosaic_0001>
module attributes {stable_mosaic.version = 11 : i64} {
  func.func @value_mlp_kernel(%arg0: i32, %arg1: memref<8x32xf32, #tpu.memory_space<vmem>>, %arg2: memref<32x16xbf16, #tpu.memory_space<vmem>>, %arg3: memref<1x16xf32, #tpu.memory_space<vmem>>, %arg4: memref<16x64xbf16, #tpu.memory_space<vmem>>, %arg5: memref<1x64xf32, #tpu.memory_space<vmem>>, %arg6: memref<64x256xbf16, #tpu.memory_space<vmem>>, %arg7: memref<1x256xf32, #tpu.memory_space<vmem>>, %arg8: memref<256x64xbf16, #tpu.memory_space<vmem>>, %arg9: memref<1x64xf32, #tpu.memory_space<vmem>>, %arg10: memref<1x64xf32, #tpu.memory_space<vmem>>, %arg11: memref<1x1xf32, #tpu.memory_space<vmem>>, %arg12: memref<8x1xf32, #tpu.memory_space<vmem>>) attributes {dimension_semantics = [#tpu.dimension_semantics<parallel>], iteration_bounds = array<i64: 1>, scalar_prefetch = 0 : i64, scratch_operands = 0 : i64, tpu.core_type = #tpu.core_type<tc>, window_params = [{transform_indices = @transform_0, window_bounds = array<i64: 8, 32>}, {pipeline_mode = #tpu.pipeline_mode<synchronous>, transform_indices = @transform_1, window_bounds = array<i64: 32, 16>}, {pipeline_mode = #tpu.pipeline_mode<synchronous>, transform_indices = @transform_2, window_bounds = array<i64: 1, 16>}, {pipeline_mode = #tpu.pipeline_mode<synchronous>, transform_indices = @transform_3, window_bounds = array<i64: 16, 64>}, {pipeline_mode = #tpu.pipeline_mode<synchronous>, transform_indices = @transform_4, window_bounds = array<i64: 1, 64>}, {pipeline_mode = #tpu.pipeline_mode<synchronous>, transform_indices = @transform_5, window_bounds = array<i64: 64, 256>}, {pipeline_mode = #tpu.pipeline_mode<synchronous>, transform_indices = @transform_6, window_bounds = array<i64: 1, 256>}, {pipeline_mode = #tpu.pipeline_mode<synchronous>, transform_indices = @transform_7, window_bounds = array<i64: 256, 64>}, {pipeline_mode = #tpu.pipeline_mode<synchronous>, transform_indices = @transform_8, window_bounds = array<i64: 1, 64>}, {pipeline_mode = #tpu.pipeline_mode<synchronous>, transform_indices = @transform_9, window_bounds = array<i64: 1, 64>}, {pipeline_mode = #tpu.pipeline_mode<synchronous>, transform_indices = @transform_10, window_bounds = array<i64: 1, 1>}, {transform_indices = @transform_11, window_bounds = array<i64: 8, 1>}]} {
    %c0 = arith.constant 0 : index
    %c0_0 = arith.constant 0 : index
    %0 = vector.load %arg1[%c0, %c0_0] : memref<8x32xf32, #tpu.memory_space<vmem>>, vector<8x32xf32>
    %1 = arith.truncf %0 : vector<8x32xf32> to vector<8x32xbf16>
    %c0_1 = arith.constant 0 : index
    %c0_2 = arith.constant 0 : index
    %2 = vector.load %arg2[%c0_1, %c0_2] : memref<32x16xbf16, #tpu.memory_space<vmem>>, vector<32x16xbf16>
    %cst = arith.constant dense<0.000000e+00> : vector<8x16xf32>
    %3 = tpu.matmul %1, %2, %cst {dimension_numbers = #tpu.dot_dimension_numbers<[1], [0], [0], [1], [0, 0, 1, 1], [], []>} : vector<8x32xbf16>, vector<32x16xbf16>, vector<8x16xf32> -> vector<8x16xf32>
    %c0_3 = arith.constant 0 : index
    %c0_4 = arith.constant 0 : index
    %4 = vector.load %arg3[%c0_3, %c0_4] : memref<1x16xf32, #tpu.memory_space<vmem>>, vector<1x16xf32>
    %5 = vector.broadcast %4 : vector<1x16xf32> to vector<8x16xf32>
    %6 = arith.addf %3, %5 : vector<8x16xf32>
    %cst_5 = arith.constant 0.000000e+00 : f32
    %7 = vector.broadcast %cst_5 : f32 to vector<8x16xf32>
    %8 = arith.maximumf %6, %7 : vector<8x16xf32>
    %9 = arith.truncf %8 : vector<8x16xf32> to vector<8x16xbf16>
    %c0_6 = arith.constant 0 : index
    %c0_7 = arith.constant 0 : index
    %10 = vector.load %arg4[%c0_6, %c0_7] : memref<16x64xbf16, #tpu.memory_space<vmem>>, vector<16x64xbf16>
    %cst_8 = arith.constant dense<0.000000e+00> : vector<8x64xf32>
    %11 = tpu.matmul %9, %10, %cst_8 {dimension_numbers = #tpu.dot_dimension_numbers<[1], [0], [0], [1], [0, 0, 1, 1], [], []>} : vector<8x16xbf16>, vector<16x64xbf16>, vector<8x64xf32> -> vector<8x64xf32>
    %c0_9 = arith.constant 0 : index
    %c0_10 = arith.constant 0 : index
    %12 = vector.load %arg5[%c0_9, %c0_10] : memref<1x64xf32, #tpu.memory_space<vmem>>, vector<1x64xf32>
    %13 = vector.broadcast %12 : vector<1x64xf32> to vector<8x64xf32>
    %14 = arith.addf %11, %13 : vector<8x64xf32>
    %cst_11 = arith.constant 0.000000e+00 : f32
    %15 = vector.broadcast %cst_11 : f32 to vector<8x64xf32>
    %16 = arith.maximumf %14, %15 : vector<8x64xf32>
    %17 = arith.truncf %16 : vector<8x64xf32> to vector<8x64xbf16>
    %c0_12 = arith.constant 0 : index
    %c0_13 = arith.constant 0 : index
    %18 = vector.load %arg6[%c0_12, %c0_13] : memref<64x256xbf16, #tpu.memory_space<vmem>>, vector<64x256xbf16>
    %cst_14 = arith.constant dense<0.000000e+00> : vector<8x256xf32>
    %19 = tpu.matmul %17, %18, %cst_14 {dimension_numbers = #tpu.dot_dimension_numbers<[1], [0], [0], [1], [0, 0, 1, 1], [], []>} : vector<8x64xbf16>, vector<64x256xbf16>, vector<8x256xf32> -> vector<8x256xf32>
    %c0_15 = arith.constant 0 : index
    %c0_16 = arith.constant 0 : index
    %20 = vector.load %arg7[%c0_15, %c0_16] : memref<1x256xf32, #tpu.memory_space<vmem>>, vector<1x256xf32>
    %21 = vector.broadcast %20 : vector<1x256xf32> to vector<8x256xf32>
    %22 = arith.addf %19, %21 : vector<8x256xf32>
    %cst_17 = arith.constant 0.000000e+00 : f32
    %23 = vector.broadcast %cst_17 : f32 to vector<8x256xf32>
    %24 = arith.maximumf %22, %23 : vector<8x256xf32>
    %25 = arith.truncf %24 : vector<8x256xf32> to vector<8x256xbf16>
    %c0_18 = arith.constant 0 : index
    %c0_19 = arith.constant 0 : index
    %26 = vector.load %arg8[%c0_18, %c0_19] : memref<256x64xbf16, #tpu.memory_space<vmem>>, vector<256x64xbf16>
    %cst_20 = arith.constant dense<0.000000e+00> : vector<8x64xf32>
    %27 = tpu.matmul %25, %26, %cst_20 {dimension_numbers = #tpu.dot_dimension_numbers<[1], [0], [0], [1], [0, 0, 1, 1], [], []>} : vector<8x256xbf16>, vector<256x64xbf16>, vector<8x64xf32> -> vector<8x64xf32>
    %c0_21 = arith.constant 0 : index
    %c0_22 = arith.constant 0 : index
    %28 = vector.load %arg9[%c0_21, %c0_22] : memref<1x64xf32, #tpu.memory_space<vmem>>, vector<1x64xf32>
    %29 = vector.broadcast %28 : vector<1x64xf32> to vector<8x64xf32>
    %30 = arith.addf %27, %29 : vector<8x64xf32>
    %cst_23 = arith.constant 0.000000e+00 : f32
    %31 = vector.broadcast %cst_23 : f32 to vector<8x64xf32>
    %32 = arith.maximumf %30, %31 : vector<8x64xf32>
    %c0_24 = arith.constant 0 : index
    %c0_25 = arith.constant 0 : index
    %33 = vector.load %arg10[%c0_24, %c0_25] : memref<1x64xf32, #tpu.memory_space<vmem>>, vector<1x64xf32>
    %34 = vector.broadcast %33 : vector<1x64xf32> to vector<8x64xf32>
    %35 = arith.mulf %32, %34 : vector<8x64xf32>
    %cst_26 = arith.constant dense<0.000000e+00> : vector<8xf32>
    %36 = vector.multi_reduction <add>, %35, %cst_26 [1] : vector<8x64xf32> to vector<8xf32>
    %37 = vector.shape_cast %36 : vector<8xf32> to vector<8x1xf32>
    %c0_27 = arith.constant 0 : index
    %c0_28 = arith.constant 0 : index
    %38 = vector.load %arg11[%c0_27, %c0_28] : memref<1x1xf32, #tpu.memory_space<vmem>>, vector<1x1xf32>
    %39 = vector.broadcast %38 : vector<1x1xf32> to vector<8x1xf32>
    %40 = arith.addf %37, %39 : vector<8x1xf32>
    %c0_29 = arith.constant 0 : index
    %c0_30 = arith.constant 0 : index
    %41 = vector.load %arg12[%c0_29, %c0_30] : memref<8x1xf32, #tpu.memory_space<vmem>>, vector<8x1xf32>
    tpu.vector_store %arg12[%c0_29, %c0_30], %40 {strides = array<i32>} : memref<8x1xf32, #tpu.memory_space<vmem>>, vector<8x1xf32>,
    return
  }
  func.func @transform_0(%arg0: i32) -> (i32, i32) {
    %c0_i32 = arith.constant 0 : i32
    %c0_i32_0 = arith.constant 0 : i32
    return %arg0, %c0_i32 : i32, i32
  }
  func.func @transform_1(%arg0: i32) -> (i32, i32) {
    %c0_i32 = arith.constant 0 : i32
    %c0_i32_0 = arith.constant 0 : i32
    %c0_i32_1 = arith.constant 0 : i32
    return %c0_i32, %c0_i32_0 : i32, i32
  }
  func.func @transform_2(%arg0: i32) -> (i32, i32) {
    %c0_i32 = arith.constant 0 : i32
    %c0_i32_0 = arith.constant 0 : i32
    %c0_i32_1 = arith.constant 0 : i32
    return %c0_i32, %c0_i32_0 : i32, i32
  }
  func.func @transform_3(%arg0: i32) -> (i32, i32) {
    %c0_i32 = arith.constant 0 : i32
    %c0_i32_0 = arith.constant 0 : i32
    %c0_i32_1 = arith.constant 0 : i32
    return %c0_i32, %c0_i32_0 : i32, i32
  }
  func.func @transform_4(%arg0: i32) -> (i32, i32) {
    %c0_i32 = arith.constant 0 : i32
    %c0_i32_0 = arith.constant 0 : i32
    %c0_i32_1 = arith.constant 0 : i32
    return %c0_i32, %c0_i32_0 : i32, i32
  }
  func.func @transform_5(%arg0: i32) -> (i32, i32) {
    %c0_i32 = arith.constant 0 : i32
    %c0_i32_0 = arith.constant 0 : i32
    %c0_i32_1 = arith.constant 0 : i32
    return %c0_i32, %c0_i32_0 : i32, i32
  }
  func.func @transform_6(%arg0: i32) -> (i32, i32) {
    %c0_i32 = arith.constant 0 : i32
    %c0_i32_0 = arith.constant 0 : i32
    %c0_i32_1 = arith.constant 0 : i32
    return %c0_i32, %c0_i32_0 : i32, i32
  }
  func.func @transform_7(%arg0: i32) -> (i32, i32) {
    %c0_i32 = arith.constant 0 : i32
    %c0_i32_0 = arith.constant 0 : i32
    %c0_i32_1 = arith.constant 0 : i32
    return %c0_i32, %c0_i32_0 : i32, i32
  }
  func.func @transform_8(%arg0: i32) -> (i32, i32) {
    %c0_i32 = arith.constant 0 : i32
    %c0_i32_0 = arith.constant 0 : i32
    %c0_i32_1 = arith.constant 0 : i32
    return %c0_i32, %c0_i32_0 : i32, i32
  }
  func.func @transform_9(%arg0: i32) -> (i32, i32) {
    %c0_i32 = arith.constant 0 : i32
    %c0_i32_0 = arith.constant 0 : i32
    %c0_i32_1 = arith.constant 0 : i32
    return %c0_i32, %c0_i32_0 : i32, i32
  }
  func.func @transform_10(%arg0: i32) -> (i32, i32) {
    %c0_i32 = arith.constant 0 : i32
    %c0_i32_0 = arith.constant 0 : i32
    %c0_i32_1 = arith.constant 0 : i32
    return %c0_i32, %c0_i32_0 : i32, i32
  }
  func.func @transform_11(%arg0: i32) -> (i32, i32) {
    %c0_i32 = arith.constant 0 : i32
    %c0_i32_0 = arith.constant 0 : i32
    return %arg0, %c0_i32 : i32, i32
  }
}

</mosaic_0001>

<bundles_post_ra>
// kernel: tpu_custom_call.1
= control target key start
LH: loop header
LB: loop body
LE: loop exit
PB: predicated region body
PF: predicated region fallthrough
CT: control target
= control target key end

     0   :  { %v593_v0 = vmov 0.0   ;;  %vm594_vm0 = vmmov 0   ;;  %vm66_vm1 = vcmask 261120   ;;  %vm127_vm2 = vcmask 130048   ;;  %s763_s1 = inlined_call_operand.vmem [shape: bf16[32,16], index: 1, kind: input, shape index: {}]   ;;  %s764_s0 = inlined_call_operand.vmem [shape: f32[8,32], index: 0, kind: input, shape index: {}]   ;;  %s765_s3 = inlined_call_operand.vmem [shape: bf16[16,64], index: 3, kind: input, shape index: {}]   ;;  %s766_s5 = inlined_call_operand.vmem [shape: bf16[64,256], index: 5, kind: input, shape index: {}]   ;;  %s767_s2 = inlined_call_operand.vmem [shape: f32[1,16], index: 2, kind: input, shape index: {}]   ;;  %s768_s7 = inlined_call_operand.vmem [shape: bf16[256,64], index: 7, kind: input, shape index: {}]   ;;  %s769_s4 = inlined_call_operand.vmem [shape: f32[1,64], index: 4, kind: input, shape index: {}]   ;;  %s770_s6 = inlined_call_operand.vmem [shape: f32[1,256], index: 6, kind: input, shape index: {}]   ;;  %s771_s10 = inlined_call_operand.<no memory space> [shape: f32[1,1], index: 10, kind: input, shape index: {}]   ;;  %s772_s8 = inlined_call_operand.vmem [shape: f32[1,64], index: 8, kind: input, shape index: {}]   ;;  %s773_s9 = inlined_call_operand.vmem [shape: f32[1,64], index: 9, kind: input, shape index: {}]   ;;  %s774_s11 = inlined_call_operand.vmem [shape: f32[8,1], index: 11, kind: output, shape index: {}]  }
   0x1   :  { %545 = vmatprep.subr.bf16.mxu1 %v593_v0  ;;  %v562_v1 = vld [vmem:[%s763_s1 + $0x8] sm:$0xff]   ;;  %549 = vmatprep.mubr.msk.bf16.mxu1 %vm594_vm0, %v593_v0  ;;  %v563_v2 = vld [vmem:[%s763_s1] sm:$0xff]   ;;  %v567_v6 = vld [vmem:[%s766_s5 + $0x34] ss:$8 sps:$4 sm:$0xff]   ;;  %v595_v22 = vmov 0   ;;  %vm233_vm3 = vcmask 523264   ;;  %v183_v47 = vlaneseq }
   0x2   :  { %546 = vmatpush3.bf16.msra.mxu1 %v562_v1  ;;  %v41_v3 = vld [vmem:[%s764_s0] sm:$0xff]  ;;  %v565_v13 = vld [vmem:[%s766_s5 + $0x30] ss:$8 sps:$4 sm:$0xff]   ;;  %v573_v18 = vld [vmem:[%s766_s5 + $0x14] ss:$8 sps:$4 sm:$0xff]   ;;  %vm477_vm4 = vcmask 7168  }
   0x3   :  { %547 = vmatprep.subr.bf16.mxu1 %v593_v0  ;;  %v42_v4 = vpack.c.bf16 %v41_v3, %v41_v3  ;;  %v564_v5 = vld [vmem:[%s765_s3] sm:$0xff]   ;;  %v571_v19 = vld [vmem:[%s766_s5 + $0x10] ss:$8 sps:$4 sm:$0xff]   ;;  %v581_v27 = vld [vmem:[%s768_s7 + $0x68] sm:$0xff]   ;;  %v184_v48 = vshrl.u32 %v183_v47, 7 }
   0x4   :  { %v483_v7 = vld [vmem:[%s767_s2] ss:$0 sm:$0xff]  ;;  %v570_v15 = vld [vmem:[%s766_s5 + $0x24] ss:$8 sps:$4 sm:$0xff]   ;;  %v577_v23 = vld [vmem:[%s768_s7 + $0x78] sm:$0xff]  }
   0x5   :  { %v568_v17 = vld [vmem:[%s766_s5 + $0x20] ss:$8 sps:$4 sm:$0xff]   ;;  %v576_v20 = vld [vmem:[%s766_s5 + $0x4] ss:$8 sps:$4 sm:$0xff]   ;;  %v578_v24 = vld [vmem:[%s768_s7 + $0x38] sm:$0xff]   ;;  %523 = vmatprep.subr.bf16.mxu0 %v577_v23  ;;  %v185_v49 = vsub.s32 0, %v184_v48 }
   0x6   :  { %548 = vmatpush3.bf16.msra.mxu1 %v563_v2  ;;  %v574_v21 = vld [vmem:[%s766_s5] ss:$8 sps:$4 sm:$0xff]   ;;  %v579_v25 = vld [vmem:[%s768_s7 + $0x70] sm:$0xff]   ;;  %524 = vmatpush3.bf16.msra.mxu0 %v578_v24  ;;  %v585_v31 = vld [vmem:[%s768_s7 + $0x58] sm:$0xff]   ;;  %v189_v51 = vsub.s32 1, %v184_v48 }
   0x7   :  { %553 = vmatprep.subr.bf16.mxu1 %v593_v0  ;;  %v580_v26 = vld [vmem:[%s768_s7 + $0x30] sm:$0xff]   ;;  %525 = vmatprep.subr.bf16.mxu0 %v579_v25  ;;  %v582_v28 = vld [vmem:[%s768_s7 + $0x28] sm:$0xff]   ;;  %v583_v29 = vld [vmem:[%s768_s7 + $0x60] sm:$0xff]  }
   0x8   :  { %v584_v30 = vld [vmem:[%s768_s7 + $0x20] sm:$0xff]   ;;  %v586_v32 = vld [vmem:[%s768_s7 + $0x18] sm:$0xff]   ;;  %v587_v33 = vld [vmem:[%s768_s7 + $0x50] sm:$0xff]  }
   0x9   :  { %550 = vmatmul.mubr.msk.bf16.vlgmr.msra.gmra.mxu1 %vm66_vm1, %v42_v4  ;;  %v588_v34 = vld [vmem:[%s768_s7 + $0x10] sm:$0xff]   ;;  %v487_v35 = vld [vmem:[%s769_s4] ss:$0 sm:$0xff]  ;;  %v589_v43 = vld [vmem:[%s768_s7 + $0x48] sm:$0xff]  }
   0xa   :  { %554 = vmatpush3.bf16.msra.mxu1 %v564_v5  ;;  %555 = vmatprep.mubr.msk.bf16.mxu1 %vm594_vm0, %v593_v0  ;;  %v590_v44 = vld [vmem:[%s768_s7 + $0x8] sm:$0xff]   ;;  %v591_v45 = vld [vmem:[%s768_s7 + $0x40] sm:$0xff]   ;;  %v16_v0 = vstv %s771_s10 }
   0xb   :  { %245 = vmatprep.subr.bf16.mxu1 %v567_v6  ;;  %526 = vmatpush3.bf16.msra.mxu0 %v580_v26  ;;  %v592_v46 = vld [vmem:[%s768_s7] sm:$0xff]   ;;  %17 = vst [vmem:[#allocation2] sm:$0x1] %v16_v0 }
   0xc   :  { %527 = vmatprep.subr.bf16.mxu0 %v581_v27  ;;  %v181_v50 = vld [vmem:[%s770_s6] sm:$0x3] }
   0xd   :  { %v186_v52 = vrot.slane %v181_v50, %v185_v49  ;;  %v190_v53 = vrot.slane %v181_v50, %v189_v51  ;;  %v499_v2 = vld [vmem:[%s772_s8] ss:$0 sm:$0xff] }
   0xf   :  { %528 = vmatpush3.bf16.msra.mxu0 %v582_v28 }
  0x10   :  { %529 = vmatprep.subr.bf16.mxu0 %v583_v29 }
  0x13   :  { %530 = vmatpush3.bf16.msra.mxu0 %v584_v30 }
  0x14   :  { %531 = vmatprep.subr.bf16.mxu0 %v585_v31 }
  0x17   :  { %532 = vmatpush3.bf16.msra.mxu0 %v586_v32 }
  0x18   :  { %533 = vmatprep.subr.bf16.mxu0 %v587_v33 }
  0x1b   :  { %534 = vmatpush3.bf16.msra.mxu0 %v588_v34 }
  0x1c   :  { %535 = vmatprep.subr.bf16.mxu0 %v589_v43 }
  0x1f   :  { %536 = vmatpush3.bf16.msra.mxu0 %v590_v44 }
  0x20   :  { %537 = vmatprep.subr.bf16.mxu0 %v591_v45 }
  0x23   :  { %538 = vmatpush3.bf16.msra.mxu0 %v592_v46 }
  0xc9   :  { %v104_v8 = vpop.f32.mrf.mxu1 }
  0xca   :  { %v105_v9 = vadd.f32 %v483_v7, %v104_v8  ;;  %v516_v8 = vld [vmem:[%s773_s9] ss:$0 sm:$0xff] }
  0xcb   :  { %v551_v10 = vpop.f32.mrf.mxu1 }
  0xcc   :  { %v110_v11 = vmax.f32 %v105_v9, 0.0 }
  0xcd   :  { %v107_v12 = vpop.f32.mrf.mxu1 }
  0xce   :  { %v111_v14 = vpack.c.bf16 %v110_v11, %v110_v11  ;;  %v517_v12 = vld [vmem:[#allocation2] ss:$0 sm:$0xff] }
  0xcf   :  { %v552_v16 = vpop.f32.mrf.mxu1 }
  0xd0   :  { %556 = vmatmul.mubr.msk.bf16.vlgmr.msra.gmra.mxu1 %vm127_vm2, %v111_v14 }
  0xd1   :  { %246 = vmatpush1.bf16.msra.mxu1 %v565_v13  ;;  %269 = vmatprep.mubr.bf16.mxu1 %v595_v22 }
  0xd2   :  { %247 = vmatprep.subr.bf16.mxu1 %v570_v15 }
  0xd5   :  { %248 = vmatpush1.bf16.msra.mxu1 %v568_v17 }
  0xd6   :  { %249 = vmatprep.subr.bf16.mxu1 %v573_v18 }
  0xd9   :  { %250 = vmatpush1.bf16.msra.mxu1 %v571_v19 }
  0xda   :  { %251 = vmatprep.subr.bf16.mxu1 %v576_v20 }
  0xdd   :  { %252 = vmatpush1.bf16.msra.mxu1 %v574_v21 }
 0x190   :  { %v165_v36 = vpop.f32.mrf.mxu1 }
 0x191   :  { %v166_v37 = vadd.f32 %v487_v35, %v165_v36 }
 0x192   :  { %v557_v38 = vpop.f32.mrf.mxu1 }
 0x193   :  { %v171_v39 = vmax.f32 %v166_v37, 0.0 }
 0x194   :  { %v168_v40 = vpop.f32.mrf.mxu1 }
 0x195   :  { %v172_v41 = vpack.c.bf16 %v171_v39, %v171_v39 }
 0x196   :  { %v558_v42 = vpop.f32.mrf.mxu1 }
 0x197   :  { %498 = vmatmul.mubr.msk.bf16.vlgmr.msra.gmra.mxu1 %vm233_vm3, %v172_v41 }
 0x257   :  { %v271_v54 = vpop.f32.mrf.mxu1 }
 0x258   :  { %v272_v55 = vadd.f32 %v271_v54, %v186_v52 }
 0x259   :  { %v273_v56 = vpop.f32.mrf.mxu1 }
 0x25a   :  { %v274_v57 = vadd.f32 %v273_v56, %v190_v53  ;;  %v278_v58 = vmax.f32 %v272_v55, 0.0 }
 0x25b   :  { %v275_v59 = vpop.f32.mrf.mxu1 }
 0x25c   :  { %v279_v60 = vmax.f32 %v274_v57, 0.0  ;;  %v280_v63 = vpack.c.bf16 %v278_v58, %v278_v58 }
 0x25d   :  { %v276_v61 = vpop.f32.mrf.mxu1 }
 0x25e   :  { %v281_v62 = vpack.c.bf16 %v279_v60, %v279_v60 }
 0x260   :  { %449 = vmatprep.mubr.bf16.mxu0 %v281_v62 }
 0x261   :  { %450 = vmatmul.mubr.bf16.vlgmr.msra.gmra.mxu0 %v280_v63 }
 0x321   :  { %v539_v1 = vpop.f32.mrf.mxu0 }
 0x323   :  { %v540_v3 = vpop.f32.mrf.mxu0 }
 0x324   :  { %v541_v4 = vadd.f32 %v540_v3, %v539_v1 }
 0x325   :  { %v542_v5 = vpop.f32.mrf.mxu0 }
 0x326   :  { %v452_v6 = vadd.f32 %v541_v4, %v499_v2 }
 0x327   :  { %v543_v7 = vpop.f32.mrf.mxu0 }
 0x328   :  { %v457_v9 = vmax.f32 %v452_v6, 0.0 }
 0x32a   :  { %v465_v10 = vmul.f32 %v516_v8, %v457_v9 }
 0x32c   :  { %v466_v11 = vsel %vm233_vm3, %v465_v10, 0.0 }
 0x32d   :  { %467 = vadd.xlane.f32.xlu0 %v466_v11 }
 0x3b6   :  { %v468_v13 = vpop.xlane.xlu0 %467 }
 0x3b7   :  { %v476_v14 = vadd.f32 %v517_v12, %v468_v13 }
 0x3b9   :  { %478 = vst.msk [vmem:[%s774_s11] sm:$0xff] %vm477_vm4, %v476_v14 }

</bundles_post_ra>
